<compile_context>
chip_gen: v5e
topology: v5e:2x2
jax: 0.10.0
libtpu: 0.0.40
codegen_flags: <defaults>
</compile_context>

<pallas_src>
import functools

import jax
import jax.numpy as jnp
from jax import lax
from jax.experimental import pallas as pl
from jax.experimental.pallas import tpu as pltpu


def _maxpool5_same(v):
    """5x5 max pool, stride 1, padding 2 (-inf border), separable.  v: (c, H, W)."""
    c, H, W = v.shape
    # Pool along H (sublane axis).
    neg_h = jnp.full((c, 2, W), -jnp.inf, v.dtype)
    vp = jnp.concatenate([neg_h, v, neg_h], axis=1)          # (c, H+4, W)
    m = vp[:, 0:H, :]
    for d in range(1, 5):
        m = jnp.maximum(m, vp[:, d:d + H, :])
    # Pool along W (lane axis).
    neg_w = jnp.full((c, H, 2), -jnp.inf, v.dtype)
    mp = jnp.concatenate([neg_w, m, neg_w], axis=2)          # (c, H, W+4)
    out = mp[:, :, 0:W]
    for d in range(1, 5):
        out = jnp.maximum(out, mp[:, :, d:d + W])
    return out


def _simsppf_kernel(x_ref, w1_ref, b1_ref, w2_ref, b2_ref, o_ref, *, H, W):
    # x_ref:  (1, C, H*W)   one image, channels x flattened spatial (lane-dense)
    # w1_ref: (c_, C)       cv1 1x1 conv weight with BN folded in
    # b1_ref: (c_, 1)       cv1 folded bias
    # w2_ref: (O, 4*c_)     cv2 1x1 conv weight with BN folded in
    # b2_ref: (O, 1)        cv2 folded bias
    # o_ref:  (1, O, H*W)
    HW = H * W

    x = x_ref[0].astype(jnp.float32)                          # (C, HW)
    w1 = w1_ref[...].astype(jnp.float32)                      # (c_, C)
    b1 = b1_ref[...].astype(jnp.float32)                      # (c_, 1)

    # cv1: 1x1 conv (matmul over channels) + folded BN + ReLU.
    z = jnp.dot(w1, x, preferred_element_type=jnp.float32) + b1   # (c_, HW)
    z = jnp.maximum(z, 0.0)

    c_ = z.shape[0]
    z3 = z.reshape(c_, H, W)

    # Cascaded 5x5 max pools (stride 1, pad 2).
    y1 = _maxpool5_same(z3)
    y2 = _maxpool5_same(y1)
    y3 = _maxpool5_same(y2)

    # Concat along channels, then cv2: 1x1 conv + folded BN + ReLU.
    cat = jnp.concatenate([z3, y1, y2, y3], axis=0)           # (4*c_, H, W)
    cat2 = cat.reshape(4 * c_, HW)

    w2 = w2_ref[...].astype(jnp.float32)                      # (O, 4*c_)
    b2 = b2_ref[...].astype(jnp.float32)                      # (O, 1)
    out = jnp.dot(w2, cat2, preferred_element_type=jnp.float32) + b2  # (O, HW)
    out = jnp.maximum(out, 0.0)

    o_ref[0] = out.astype(o_ref.dtype)


def simsppf_pallas(x, w1, b1, w2, b2):
    """x: (B, C, H, W); w1: (c_, C); b1: (c_,); w2: (O, 4*c_); b2: (O,)."""
    B, C, H, W = x.shape
    c_ = w1.shape[0]
    O = w2.shape[0]
    HW = H * W

    x_flat = x.reshape(B, C, HW)           # lane-dense input blocks (free reshape in XLA)
    b1_2d = b1.reshape(c_, 1)
    b2_2d = b2.reshape(O, 1)

    itemsize = jnp.dtype(x.dtype).itemsize
    flops = 2 * B * HW * (c_ * C + O * 4 * c_)
    bytes_accessed = (x_flat.size + B * O * HW) * itemsize + \
        (w1.size + b1.size + w2.size + b2.size) * 4

    kernel = functools.partial(_simsppf_kernel, H=H, W=W)

    out = pl.pallas_call(
        kernel,
        out_shape=jax.ShapeDtypeStruct((B, O, HW), x.dtype),
        grid_spec=pltpu.PrefetchScalarGridSpec(
            num_scalar_prefetch=0,
            grid=(B,),
            in_specs=[
                pl.BlockSpec((1, C, HW), lambda b: (b, 0, 0)),
                pl.BlockSpec((c_, C), lambda b: (0, 0)),
                pl.BlockSpec((c_, 1), lambda b: (0, 0)),
                pl.BlockSpec((O, 4 * c_), lambda b: (0, 0)),
                pl.BlockSpec((O, 1), lambda b: (0, 0)),
            ],
            out_specs=pl.BlockSpec((1, O, HW), lambda b: (b, 0, 0)),
        ),
        compiler_params=pltpu.CompilerParams(
            dimension_semantics=("parallel",)),
        cost_estimate=pl.CostEstimate(
            flops=flops, transcendentals=0, bytes_accessed=bytes_accessed),
    )(x_flat, w1, b1_2d, w2, b2_2d)

    return out.reshape(B, O, H, W)


def simsppf_ref(x, w1, b1, w2, b2):
    """Pure-JAX reference of the SimSPPF forward (BN folded, inference semantics)."""
    z = jnp.einsum('kc,bchw->bkhw', w1, x) + b1[None, :, None, None]
    z = jnp.maximum(z, 0.0)

    def mp(v):
        return lax.reduce_window(
            v, -jnp.inf, lax.max,
            window_dimensions=(1, 1, 5, 5),
            window_strides=(1, 1, 1, 1),
            padding=((0, 0), (0, 0), (2, 2), (2, 2)))

    y1 = mp(z)
    y2 = mp(y1)
    y3 = mp(y2)
    cat = jnp.concatenate([z, y1, y2, y3], axis=1)
    out = jnp.einsum('ok,bkhw->bohw', w2, cat) + b2[None, :, None, None]
    return jnp.maximum(out, 0.0)


def _fold_bn(conv_w, gamma, beta, mean, var, eps=1e-5):
    """Fold BatchNorm (running stats) into a 1x1 conv: returns (w_eff, b_eff)."""
    scale = gamma / jnp.sqrt(var + eps)
    w_eff = conv_w * scale[:, None]
    b_eff = beta - mean * scale
    return w_eff, b_eff


if __name__ == "__main__":
    # SimSPPF(in_channels=4, out_channels=4): c_ = 2.
    B, C, H, W = 2, 4, 16, 16
    O = 4
    c_ = C // 2

    key = jax.random.PRNGKey(0)
    keys = jax.random.split(key, 11)

    x = jax.random.normal(keys[0], (B, C, H, W), dtype=jnp.float32)

    # cv1 = Conv2d(C, c_, 1, bias=False) + BN(c_) ; cv2 = Conv2d(4*c_, O, 1, bias=False) + BN(O)
    conv1_w = jax.random.normal(keys[1], (c_, C), dtype=jnp.float32) * 0.5
    gamma1 = jax.random.normal(keys[2], (c_,), dtype=jnp.float32) * 0.1 + 1.0
    beta1 = jax.random.normal(keys[3], (c_,), dtype=jnp.float32) * 0.1
    mean1 = jax.random.normal(keys[4], (c_,), dtype=jnp.float32) * 0.1
    var1 = jax.random.uniform(keys[5], (c_,), dtype=jnp.float32, minval=0.5, maxval=1.5)

    conv2_w = jax.random.normal(keys[6], (O, 4 * c_), dtype=jnp.float32) * 0.5
    gamma2 = jax.random.normal(keys[7], (O,), dtype=jnp.float32) * 0.1 + 1.0
    beta2 = jax.random.normal(keys[8], (O,), dtype=jnp.float32) * 0.1
    mean2 = jax.random.normal(keys[9], (O,), dtype=jnp.float32) * 0.1
    var2 = jax.random.uniform(keys[10], (O,), dtype=jnp.float32, minval=0.5, maxval=1.5)

    w1, b1 = _fold_bn(conv1_w, gamma1, beta1, mean1, var1)
    w2, b2 = _fold_bn(conv2_w, gamma2, beta2, mean2, var2)

    out = simsppf_pallas(x, w1, b1, w2, b2)
    out = jax.block_until_ready(out)

    ref = simsppf_ref(x, w1, b1, w2, b2)

    assert out.shape == ref.shape, (out.shape, ref.shape)
    assert out.dtype == ref.dtype, (out.dtype, ref.dtype)
    assert bool(jnp.allclose(out, ref, rtol=1e-5, atol=1e-5)), "SimSPPF kernel mismatch"
    print("KERNEL_OK")
</pallas_src>

<mosaic_0001>
module attributes {stable_mosaic.version = 11 : i64} {
  func.func @_simsppf_kernel(%arg0: i32, %arg1: memref<1x4x256xf32, #tpu.memory_space<vmem>>, %arg2: memref<2x4xf32, #tpu.memory_space<vmem>>, %arg3: memref<2x1xf32, #tpu.memory_space<vmem>>, %arg4: memref<4x8xf32, #tpu.memory_space<vmem>>, %arg5: memref<4x1xf32, #tpu.memory_space<vmem>>, %arg6: memref<1x4x256xf32, #tpu.memory_space<vmem>>) attributes {dimension_semantics = [#tpu.dimension_semantics<parallel>], iteration_bounds = array<i64: 2>, scalar_prefetch = 0 : i64, scratch_operands = 0 : i64, tpu.core_type = #tpu.core_type<tc>, window_params = [{transform_indices = @transform_0, window_bounds = array<i64: 1, 4, 256>}, {pipeline_mode = #tpu.pipeline_mode<synchronous>, transform_indices = @transform_1, window_bounds = array<i64: 2, 4>}, {pipeline_mode = #tpu.pipeline_mode<synchronous>, transform_indices = @transform_2, window_bounds = array<i64: 2, 1>}, {pipeline_mode = #tpu.pipeline_mode<synchronous>, transform_indices = @transform_3, window_bounds = array<i64: 4, 8>}, {pipeline_mode = #tpu.pipeline_mode<synchronous>, transform_indices = @transform_4, window_bounds = array<i64: 4, 1>}, {transform_indices = @transform_5, window_bounds = array<i64: 1, 4, 256>}]} {
    %c0 = arith.constant 0 : index
    %c0_0 = arith.constant 0 : index
    %c0_1 = arith.constant 0 : index
    %0 = vector.load %arg1[%c0, %c0_0, %c0_1] : memref<1x4x256xf32, #tpu.memory_space<vmem>>, vector<1x4x256xf32>
    %1 = vector.shape_cast %0 : vector<1x4x256xf32> to vector<4x256xf32>
    %c0_2 = arith.constant 0 : index
    %c0_3 = arith.constant 0 : index
    %2 = vector.load %arg2[%c0_2, %c0_3] : memref<2x4xf32, #tpu.memory_space<vmem>>, vector<2x4xf32>
    %c0_4 = arith.constant 0 : index
    %c0_5 = arith.constant 0 : index
    %3 = vector.load %arg3[%c0_4, %c0_5] : memref<2x1xf32, #tpu.memory_space<vmem>>, vector<2x1xf32>
    %cst = arith.constant dense<0.000000e+00> : vector<2x256xf32>
    %4 = tpu.matmul %2, %1, %cst {dimension_numbers = #tpu.dot_dimension_numbers<[1], [0], [0], [1], [0, 0, 1, 1], [], []>} : vector<2x4xf32>, vector<4x256xf32>, vector<2x256xf32> -> vector<2x256xf32>
    %5 = vector.broadcast %3 : vector<2x1xf32> to vector<2x256xf32>
    %6 = arith.addf %4, %5 : vector<2x256xf32>
    %cst_6 = arith.constant 0.000000e+00 : f32
    %7 = vector.broadcast %cst_6 : f32 to vector<2x256xf32>
    %8 = arith.maximumf %6, %7 : vector<2x256xf32>
    %9 = vector.shape_cast %8 : vector<2x256xf32> to vector<2x16x16xf32>
    %cst_7 = arith.constant 0xFF800000 : f32
    %10 = vector.broadcast %cst_7 : f32 to vector<2x2x16xf32>
    %11 = tpu.concatenate %10, %9, %10 in 1 : vector<2x2x16xf32>, vector<2x16x16xf32>, vector<2x2x16xf32> -> vector<2x20x16xf32>
    %12 = vector.extract_strided_slice %11 {offsets = [0, 0, 0], sizes = [2, 16, 16], strides = [1, 1, 1]} : vector<2x20x16xf32> to vector<2x16x16xf32>
    %13 = vector.extract_strided_slice %11 {offsets = [0, 1, 0], sizes = [2, 16, 16], strides = [1, 1, 1]} : vector<2x20x16xf32> to vector<2x16x16xf32>
    %14 = arith.maximumf %12, %13 : vector<2x16x16xf32>
    %15 = vector.extract_strided_slice %11 {offsets = [0, 2, 0], sizes = [2, 16, 16], strides = [1, 1, 1]} : vector<2x20x16xf32> to vector<2x16x16xf32>
    %16 = arith.maximumf %14, %15 : vector<2x16x16xf32>
    %17 = vector.extract_strided_slice %11 {offsets = [0, 3, 0], sizes = [2, 16, 16], strides = [1, 1, 1]} : vector<2x20x16xf32> to vector<2x16x16xf32>
    %18 = arith.maximumf %16, %17 : vector<2x16x16xf32>
    %19 = vector.extract_strided_slice %11 {offsets = [0, 4, 0], sizes = [2, 16, 16], strides = [1, 1, 1]} : vector<2x20x16xf32> to vector<2x16x16xf32>
    %20 = arith.maximumf %18, %19 : vector<2x16x16xf32>
    %cst_8 = arith.constant 0xFF800000 : f32
    %21 = vector.broadcast %cst_8 : f32 to vector<2x16x2xf32>
    %22 = tpu.concatenate %21, %20, %21 in 2 : vector<2x16x2xf32>, vector<2x16x16xf32>, vector<2x16x2xf32> -> vector<2x16x20xf32>
    %23 = vector.extract_strided_slice %22 {offsets = [0, 0, 0], sizes = [2, 16, 16], strides = [1, 1, 1]} : vector<2x16x20xf32> to vector<2x16x16xf32>
    %24 = vector.extract_strided_slice %22 {offsets = [0, 0, 1], sizes = [2, 16, 16], strides = [1, 1, 1]} : vector<2x16x20xf32> to vector<2x16x16xf32>
    %25 = arith.maximumf %23, %24 : vector<2x16x16xf32>
    %26 = vector.extract_strided_slice %22 {offsets = [0, 0, 2], sizes = [2, 16, 16], strides = [1, 1, 1]} : vector<2x16x20xf32> to vector<2x16x16xf32>
    %27 = arith.maximumf %25, %26 : vector<2x16x16xf32>
    %28 = vector.extract_strided_slice %22 {offsets = [0, 0, 3], sizes = [2, 16, 16], strides = [1, 1, 1]} : vector<2x16x20xf32> to vector<2x16x16xf32>
    %29 = arith.maximumf %27, %28 : vector<2x16x16xf32>
    %30 = vector.extract_strided_slice %22 {offsets = [0, 0, 4], sizes = [2, 16, 16], strides = [1, 1, 1]} : vector<2x16x20xf32> to vector<2x16x16xf32>
    %31 = arith.maximumf %29, %30 : vector<2x16x16xf32>
    %cst_9 = arith.constant 0xFF800000 : f32
    %32 = vector.broadcast %cst_9 : f32 to vector<2x2x16xf32>
    %33 = tpu.concatenate %32, %31, %32 in 1 : vector<2x2x16xf32>, vector<2x16x16xf32>, vector<2x2x16xf32> -> vector<2x20x16xf32>
    %34 = vector.extract_strided_slice %33 {offsets = [0, 0, 0], sizes = [2, 16, 16], strides = [1, 1, 1]} : vector<2x20x16xf32> to vector<2x16x16xf32>
    %35 = vector.extract_strided_slice %33 {offsets = [0, 1, 0], sizes = [2, 16, 16], strides = [1, 1, 1]} : vector<2x20x16xf32> to vector<2x16x16xf32>
    %36 = arith.maximumf %34, %35 : vector<2x16x16xf32>
    %37 = vector.extract_strided_slice %33 {offsets = [0, 2, 0], sizes = [2, 16, 16], strides = [1, 1, 1]} : vector<2x20x16xf32> to vector<2x16x16xf32>
    %38 = arith.maximumf %36, %37 : vector<2x16x16xf32>
    %39 = vector.extract_strided_slice %33 {offsets = [0, 3, 0], sizes = [2, 16, 16], strides = [1, 1, 1]} : vector<2x20x16xf32> to vector<2x16x16xf32>
    %40 = arith.maximumf %38, %39 : vector<2x16x16xf32>
    %41 = vector.extract_strided_slice %33 {offsets = [0, 4, 0], sizes = [2, 16, 16], strides = [1, 1, 1]} : vector<2x20x16xf32> to vector<2x16x16xf32>
    %42 = arith.maximumf %40, %41 : vector<2x16x16xf32>
    %cst_10 = arith.constant 0xFF800000 : f32
    %43 = vector.broadcast %cst_10 : f32 to vector<2x16x2xf32>
    %44 = tpu.concatenate %43, %42, %43 in 2 : vector<2x16x2xf32>, vector<2x16x16xf32>, vector<2x16x2xf32> -> vector<2x16x20xf32>
    %45 = vector.extract_strided_slice %44 {offsets = [0, 0, 0], sizes = [2, 16, 16], strides = [1, 1, 1]} : vector<2x16x20xf32> to vector<2x16x16xf32>
    %46 = vector.extract_strided_slice %44 {offsets = [0, 0, 1], sizes = [2, 16, 16], strides = [1, 1, 1]} : vector<2x16x20xf32> to vector<2x16x16xf32>
    %47 = arith.maximumf %45, %46 : vector<2x16x16xf32>
    %48 = vector.extract_strided_slice %44 {offsets = [0, 0, 2], sizes = [2, 16, 16], strides = [1, 1, 1]} : vector<2x16x20xf32> to vector<2x16x16xf32>
    %49 = arith.maximumf %47, %48 : vector<2x16x16xf32>
    %50 = vector.extract_strided_slice %44 {offsets = [0, 0, 3], sizes = [2, 16, 16], strides = [1, 1, 1]} : vector<2x16x20xf32> to vector<2x16x16xf32>
    %51 = arith.maximumf %49, %50 : vector<2x16x16xf32>
    %52 = vector.extract_strided_slice %44 {offsets = [0, 0, 4], sizes = [2, 16, 16], strides = [1, 1, 1]} : vector<2x16x20xf32> to vector<2x16x16xf32>
    %53 = arith.maximumf %51, %52 : vector<2x16x16xf32>
    %cst_11 = arith.constant 0xFF800000 : f32
    %54 = vector.broadcast %cst_11 : f32 to vector<2x2x16xf32>
    %55 = tpu.concatenate %54, %53, %54 in 1 : vector<2x2x16xf32>, vector<2x16x16xf32>, vector<2x2x16xf32> -> vector<2x20x16xf32>
    %56 = vector.extract_strided_slice %55 {offsets = [0, 0, 0], sizes = [2, 16, 16], strides = [1, 1, 1]} : vector<2x20x16xf32> to vector<2x16x16xf32>
    %57 = vector.extract_strided_slice %55 {offsets = [0, 1, 0], sizes = [2, 16, 16], strides = [1, 1, 1]} : vector<2x20x16xf32> to vector<2x16x16xf32>
    %58 = arith.maximumf %56, %57 : vector<2x16x16xf32>
    %59 = vector.extract_strided_slice %55 {offsets = [0, 2, 0], sizes = [2, 16, 16], strides = [1, 1, 1]} : vector<2x20x16xf32> to vector<2x16x16xf32>
    %60 = arith.maximumf %58, %59 : vector<2x16x16xf32>
    %61 = vector.extract_strided_slice %55 {offsets = [0, 3, 0], sizes = [2, 16, 16], strides = [1, 1, 1]} : vector<2x20x16xf32> to vector<2x16x16xf32>
    %62 = arith.maximumf %60, %61 : vector<2x16x16xf32>
    %63 = vector.extract_strided_slice %55 {offsets = [0, 4, 0], sizes = [2, 16, 16], strides = [1, 1, 1]} : vector<2x20x16xf32> to vector<2x16x16xf32>
    %64 = arith.maximumf %62, %63 : vector<2x16x16xf32>
    %cst_12 = arith.constant 0xFF800000 : f32
    %65 = vector.broadcast %cst_12 : f32 to vector<2x16x2xf32>
    %66 = tpu.concatenate %65, %64, %65 in 2 : vector<2x16x2xf32>, vector<2x16x16xf32>, vector<2x16x2xf32> -> vector<2x16x20xf32>
    %67 = vector.extract_strided_slice %66 {offsets = [0, 0, 0], sizes = [2, 16, 16], strides = [1, 1, 1]} : vector<2x16x20xf32> to vector<2x16x16xf32>
    %68 = vector.extract_strided_slice %66 {offsets = [0, 0, 1], sizes = [2, 16, 16], strides = [1, 1, 1]} : vector<2x16x20xf32> to vector<2x16x16xf32>
    %69 = arith.maximumf %67, %68 : vector<2x16x16xf32>
    %70 = vector.extract_strided_slice %66 {offsets = [0, 0, 2], sizes = [2, 16, 16], strides = [1, 1, 1]} : vector<2x16x20xf32> to vector<2x16x16xf32>
    %71 = arith.maximumf %69, %70 : vector<2x16x16xf32>
    %72 = vector.extract_strided_slice %66 {offsets = [0, 0, 3], sizes = [2, 16, 16], strides = [1, 1, 1]} : vector<2x16x20xf32> to vector<2x16x16xf32>
    %73 = arith.maximumf %71, %72 : vector<2x16x16xf32>
    %74 = vector.extract_strided_slice %66 {offsets = [0, 0, 4], sizes = [2, 16, 16], strides = [1, 1, 1]} : vector<2x16x20xf32> to vector<2x16x16xf32>
    %75 = arith.maximumf %73, %74 : vector<2x16x16xf32>
    %76 = tpu.concatenate %9, %31, %53, %75 in 0 : vector<2x16x16xf32>, vector<2x16x16xf32>, vector<2x16x16xf32>, vector<2x16x16xf32> -> vector<8x16x16xf32>
    %77 = vector.shape_cast %76 : vector<8x16x16xf32> to vector<8x256xf32>
    %c0_13 = arith.constant 0 : index
    %c0_14 = arith.constant 0 : index
    %78 = vector.load %arg4[%c0_13, %c0_14] : memref<4x8xf32, #tpu.memory_space<vmem>>, vector<4x8xf32>
    %c0_15 = arith.constant 0 : index
    %c0_16 = arith.constant 0 : index
    %79 = vector.load %arg5[%c0_15, %c0_16] : memref<4x1xf32, #tpu.memory_space<vmem>>, vector<4x1xf32>
    %cst_17 = arith.constant dense<0.000000e+00> : vector<4x256xf32>
    %80 = tpu.matmul %78, %77, %cst_17 {dimension_numbers = #tpu.dot_dimension_numbers<[1], [0], [0], [1], [0, 0, 1, 1], [], []>} : vector<4x8xf32>, vector<8x256xf32>, vector<4x256xf32> -> vector<4x256xf32>
    %81 = vector.broadcast %79 : vector<4x1xf32> to vector<4x256xf32>
    %82 = arith.addf %80, %81 : vector<4x256xf32>
    %cst_18 = arith.constant 0.000000e+00 : f32
    %83 = vector.broadcast %cst_18 : f32 to vector<4x256xf32>
    %84 = arith.maximumf %82, %83 : vector<4x256xf32>
    %c0_19 = arith.constant 0 : index
    %c0_20 = arith.constant 0 : index
    %c0_21 = arith.constant 0 : index
    %85 = vector.load %arg6[%c0_19, %c0_20, %c0_21] : memref<1x4x256xf32, #tpu.memory_space<vmem>>, vector<1x4x256xf32>
    %86 = vector.shape_cast %85 : vector<1x4x256xf32> to vector<4x256xf32>
    %87 = vector.shape_cast %84 : vector<4x256xf32> to vector<1x4x256xf32>
    tpu.vector_store %arg6[%c0_19, %c0_20, %c0_21], %87 {strides = array<i32>} : memref<1x4x256xf32, #tpu.memory_space<vmem>>, vector<1x4x256xf32>,
    return
  }
  func.func @transform_0(%arg0: i32) -> (i32, i32, i32) {
    %c0_i32 = arith.constant 0 : i32
    %c0_i32_0 = arith.constant 0 : i32
    %c0_i32_1 = arith.constant 0 : i32
    return %arg0, %c0_i32, %c0_i32_0 : i32, i32, i32
  }
  func.func @transform_1(%arg0: i32) -> (i32, i32) {
    %c0_i32 = arith.constant 0 : i32
    %c0_i32_0 = arith.constant 0 : i32
    %c0_i32_1 = arith.constant 0 : i32
    return %c0_i32, %c0_i32_0 : i32, i32
  }
  func.func @transform_2(%arg0: i32) -> (i32, i32) {
    %c0_i32 = arith.constant 0 : i32
    %c0_i32_0 = arith.constant 0 : i32
    %c0_i32_1 = arith.constant 0 : i32
    return %c0_i32, %c0_i32_0 : i32, i32
  }
  func.func @transform_3(%arg0: i32) -> (i32, i32) {
    %c0_i32 = arith.constant 0 : i32
    %c0_i32_0 = arith.constant 0 : i32
    %c0_i32_1 = arith.constant 0 : i32
    return %c0_i32, %c0_i32_0 : i32, i32
  }
  func.func @transform_4(%arg0: i32) -> (i32, i32) {
    %c0_i32 = arith.constant 0 : i32
    %c0_i32_0 = arith.constant 0 : i32
    %c0_i32_1 = arith.constant 0 : i32
    return %c0_i32, %c0_i32_0 : i32, i32
  }
  func.func @transform_5(%arg0: i32) -> (i32, i32, i32) {
    %c0_i32 = arith.constant 0 : i32
    %c0_i32_0 = arith.constant 0 : i32
    %c0_i32_1 = arith.constant 0 : i32
    return %arg0, %c0_i32, %c0_i32_0 : i32, i32, i32
  }
}

</mosaic_0001>

<bundles_post_ra>
// kernel: tpu_custom_call.1
= control target key start
LH: loop header
LB: loop body
LE: loop exit
PB: predicated region body
PF: predicated region fallthrough
CT: control target
= control target key end

     0   :  { %10 = vsyncpa [#allocation3], 0  ;;  %s2445_s0 = inlined_call_operand.hbm [shape: f32[2,4,256], index: 0, kind: input, shape index: {}]   ;;  %s2446_s1 = inlined_call_operand.vmem [shape: f32[2,4], index: 1, kind: input, shape index: {}]   ;;  %s2447_s2 = inlined_call_operand.vmem [shape: f32[2,1], index: 2, kind: input, shape index: {}]   ;;  %s2448_s3 = inlined_call_operand.vmem [shape: f32[4,8], index: 3, kind: input, shape index: {}]   ;;  %s2449_s4 = inlined_call_operand.vmem [shape: f32[4,1], index: 4, kind: input, shape index: {}]   ;;  %s2450_s5 = inlined_call_operand.hbm [shape: f32[2,4,256], index: 5, kind: output, shape index: {}]  }
   0x1   :  { %12 = vsyncpa [#allocation3 + $0x1], 0 }
   0x2   :  { %13 = vsyncpa [#allocation4], 0 }
   0x3   :  { %15 = vsyncpa [#allocation4 + $0x1], 0  ;;  %s1895_s18 = smov 0   ;;  %s1897_s19 = smov 0  }
   0x4   :  { %s1899_s20 = smov 0   ;;  %s1901_s21 = smov 0  }
   0x5 LB: > { %s1916_s22 = sadd.s32 4294967295, %s1848_s21   ;;  %s1448_s23 = sadd.s32 4294967294, %s1848_s21   ;;  %s1848_s21 = sphi %s1901_s21, %s2460_s21   ;;  %s1844_s20 = sphi %s1899_s20, %s2459_s20   ;;  %s1840_s19 = sphi %s1897_s19, %s2458_s19   ;;  %s1836_s18 = sphi %s1895_s18, %s2457_s18  }
   0x6   : > { %s1920_s24 = sadd.s32 1, %s1848_s21   ;;  %s28_s25 = sadd.s32 1, %s1844_s20 }
   0x7   : > { %s25_s26 = ssub.s32 %s1848_s21, %s1920_s24  ;;  %p35_p0 = scmp.ne.s32.totalorder %s1844_s20, %s1840_s19 }
   0x8   : > { %p26_p1 = scmp.eq.s32.totalorder %s25_s26, 0  ;;  %p36_p2 = scmp.eq.s32.totalorder %s1848_s21, 0 }
   0x9   : > { %p41_p3 = scmp.ne.s32.totalorder %s1840_s19, %s1836_s18  ;;  %p42_p4 = scmp.eq.s32.totalorder %s1916_s22, 0 }
   0xa   : > { %s1932_s27 = scalar_select %p26_p1, %s1844_s20, %s28_s25  }
   0xb   : > { %p1934_p5 = por %p36_p2, %p35_p0  ;;  %p1938_p6 = por %p42_p4, %p41_p3 }
   0xc   : > { %p149_p7 = scmp.eq.s32.totalorder %s1916_s22, 1  ;;  %p155_p8 = scmp.eq.s32.totalorder %s1448_s23, 1 }
   0xd   : > { %p1482_p10 = scmp.lt.s32.totalorder %s1848_s21, 2  ;;  %s187_s7 = sand.u32 1, %s1844_s20  }
   0xe   : > { %p1945_p11 = por %p149_p7, %p35_p0  ;;  %p1949_p12 = por %p155_p8, %p41_p3 }
   0xf   : > { %s1468_s8 = sshll.u32 %s1848_s21, 3  ;;  %s1451_s9 = sshll.u32 %s187_s7, 3 }
  0x10   : > { %s196_s12 = scalar_lea.hbm %s2445_s0, %s1468_s8  ;;  %s191_s14 = scalar_lea.vmem [#allocation2], %s1451_s9 }
  0x11   : > { %s198_s13 = sshll.u32 %s196_s12, 4  ;;  %s200_s15 = sshll.u32 %s191_s14, 4  ;;  %s199_s13 = int_to_ptr.hbm [resolvable:$true] %s198_s13  ;;  %s201_s15 = int_to_ptr.vmem [resolvable:$true] %s200_s15 }
  0x12   : > { %p1960_p13 = pnand %p1482_p10, %p1934_p5  ;;  %p1454_p0 = scmp.ge.s32.totalorder %s1848_s21, 1 }
  0x13   : > { %p205_p1 = scmp.lt.s32.totalorder %s1848_s21, 3  ;;  %s188_s17 = scalar_lea.sflag [#allocation3], %s187_s7 }
  0x14   : > { %s1752_s23 = sshra.s32 %s199_s13, 4  ;;  %p1756_p3 = pneg %p1960_p13  ;;  %s1753_s23 = int_to_ptr.hbm [resolvable:$true] %s1752_s23 }
  0x15   : > { %s1754_s25 = scalar_lea.hbm %s1753_s23, 8  ;;  %s1759_s28 = scalar_lea.hbm %s2445_s0, 16 }
  0x16   : > { %p1755_p2 = scmp.ne.s32.totalorder %s1753_s23, %s1754_s25  ;;  %p1760_p5 = scmp.lt.s32.totalorder %s1753_s23, %s2445_s0 }
  0x17   : > { %p1761_p8 = scmp.lt.s32.totalorder %s1759_s28, %s1754_s25 }
  0x18   : > { %p1757_p4 = pnand %p1756_p3, %p1755_p2 }
  0x19   : > { %p1762_p10 = por %p1761_p8, %p1760_p5 }
  0x1a   : > { %p1758_p7 = pneg %p1757_p4 }
  0x1c   : > { %p1763_p9 = pnand %p1762_p10, %p1758_p7 }
  0x1e   : > { %1766 = shalt.err (!%p1763_p9)
}
  0x1f   : > { %1477 = dma.hbm_to_vmem [thread:$0]  (!%p1960_p13), %s199_s13, 128, %s201_s15, %s188_s17  }
  0x20   : > { %p206_p2 = pnand %p1454_p0, %p205_p1 }
  0x21   : > { %s1981_s7 = sand.u32 (!%p206_p2), 1, %s1840_s19  }
  0x22   : > { %209 = sbr.rel (%p206_p2) target bundleno = 1423 (0x58f), region = 40  ;;  %s1455_s11 = sshll.u32 (!%p206_p2), %s1981_s7, 3 }
  0x23   : > { %s212_s12 = scalar_lea.sflag (!%p206_p2), [#allocation3], %s1981_s7  ;;  %s215_s14 = scalar_lea.vmem (!%p206_p2), [#allocation2], %s1455_s11 }
  0x27   : > { %1827 = dma.done.wait (%p1938_p6), %s212_s12, 128  }
  0x28   : > { %1829 = vsyncadd (%p1938_p6), %s212_s12, 4294967168  ;;  %v1850_v0 = vmov 0   ;;  %v243_v1 = vld [vmem:[%s215_s14] sm:$0xff]  ;;  %v245_v2 = vld [vmem:[%s2447_s2] sm:$0x3]  ;;  %vm259_vm0 = vcmask 1043456  }
  0x29   : > { %1531 = vset.pattern.permute.xlu0 %v1850_v0  ;;  %252 = vst [vmem:[#allocation1] ss:$2 sm:$0xff] %v243_v1  ;;  %v244_v3 = vld [vmem:[%s2446_s1] sm:$0x3]  ;;  %vm255_vm1 = vcmask 31744   ;;  %s1851_s29 = smov 32  }
  0x2a   : > { %248 = vperm.xlu0 %1531, %v245_v2   ;;  %s1852_s23 = smov 80   ;;  %s1853_s25 = smov 16   ;;  %v1858_v20 = vmov 1983009808   ;;  %vm351_vm2 = vcmask 1047556   ;;  %vm435_vm3 = vcmask 1041408  }
  0x2b   : > { %s1854_s26 = smov 112   ;;  %s1855_s8 = smov 48   ;;  %v354_v21 = vunpack.c.l.s4 %v1858_v20  ;;  %v1859_v35 = vmov 1934713408   ;;  %vm456_vm4 = vcmask 1046528   ;;  %vm475_vm5 = vcmask 1045504  }
  0x2c   : > { %s1856_s28 = smov 96   ;;  %s1857_s9 = smov 64   ;;  %v378_v36 = vunpack.c.l.s4 %v1859_v35  ;;  %vm494_vm6 = vcmask 1044480   ;;  %vm547_vm7 = vcmask 15360   ;;  %vm552_vm8 = vcmask 146432  }
  0x2d   : > { %v2006_v26 = vunpack.c.0.s8 %v354_v21  ;;  %s1860_s10 = smov 2   ;;  %s1861_s12 = smov 126   ;;  %vm1281_vm9 = vcmask 130048   ;;  %vm1283_vm10 = vcmask 261120   ;;  %vm1285_vm11 = vcmask 392192  }
  0x2e   : > { %v2014_v49 = vunpack.c.0.s8 %v378_v36  ;;  %s1862_s14 = smov 127   ;;  %s1863_s13 = smov 125   ;;  %vm1287_vm12 = vcmask 523264   ;;  %vm1289_vm13 = vcmask 654336   ;;  %vm1291_vm14 = vcmask 785408  }
  0x2f   : > { %s1864_s15 = smov 124   ;;  %vm1293_vm15 = vcmask 916480  }
  0x30   : > { %v253_v4 = vld.sshfl [vmem:[#allocation1] sm:$0xff pattern:$0x75316420]  ;;  %v254_v5 = vld.sshfl [vmem:[#allocation1 + $0x8] sm:$0xff pattern:$0x75316420] }
  0x31   : > { %1457 = vmatpush.msk.msra.mxu0 %vm259_vm0, %v253_v4  ;;  %1459 = vmatpush.msk.msra.mxu1 %vm259_vm0, %v254_v5 }
  0x32   : > { %1458 = vmatmul.msk.f32.vlgmr.msra.gmra.mxu0 %vm255_vm1, %v244_v3  ;;  %1460 = vmatmul.msk.f32.vlgmr.msra.gmra.mxu1 %vm255_vm1, %v244_v3  ;;  %vm1309_vm1 = vcmask 64512  }
  0x9c   : > { %v249_v6 = vpop.permute.xlu0 %248 }
  0xaf   : > { %v281_v7 = vpop.f32.mrf.mxu0  ;;  %v301_v8 = vpop.f32.mrf.mxu1 }
  0xb0   : > { %v282_v9 = vadd.f32 %v281_v7, %v249_v6  ;;  %v302_v10 = vadd.f32 %v301_v8, %v249_v6 }
  0xb2   : > { %v304_v11 = vmax.f32 %v282_v9, 0.0  ;;  %v305_v12 = vmax.f32 %v302_v10, 0.0 }
  0xb4   : > { %v1547_v13 = vpack.i.bf16 %v305_v12, %v304_v11 }
  0xb6   : > { %1548 = vrot.lane.b32.xlu2 %v1547_v13, %s1851_s29  ;;  %1538 = vrot.lane.b32.xlu1 %v1547_v13, %s1852_s23 }
  0xb7   : > { %1533 = vrot.lane.b32.xlu0 %v1547_v13, %s1853_s25 }
  0xbe   : > { %1553 = vrot.lane.b32.xlu2 %v1547_v13, %s1854_s26  ;;  %1543 = vrot.lane.b32.xlu1 %v1547_v13, %s1855_s8 }
  0xbf   : > { %1558 = vrot.lane.b32.xlu0 %v1547_v13, %s1856_s28 }
  0xc6   : > { %1563 = vrot.lane.b32.xlu1 %v1547_v13, %s1857_s9 }
 0x110   : > { %v1549_v14 = vpop.permute.xlu2 %1548 }
 0x111   : > { %v1551_v43 = vunpack.i.h.bf16 %v1549_v14  ;;  %v1550_v44 = vunpack.i.l.bf16 %v1549_v14 }
 0x113   : > { %v403_v56 = vrot.slane %v1551_v43, 4  ;;  %v363_v57 = vrot.slane %v1550_v44, 4 }
 0x118   : > { %v1554_v19 = vpop.permute.xlu2 %1553 }
 0x119   : > { %v1556_v24 = vunpack.i.h.bf16 %v1554_v19  ;;  %v1555_v25 = vunpack.i.l.bf16 %v1554_v19 }
 0x128   : > { %v1539_v15 = vpop.permute.xlu1 %1538 }
 0x129   : > { %v1541_v16 = vunpack.i.h.bf16 %v1539_v15  ;;  %v1540_v17 = vunpack.i.l.bf16 %v1539_v15  ;;  %v1534_v18 = vpop.permute.xlu0 %1533 }
 0x12a   : > { %v1536_v27 = vunpack.i.h.bf16 %v1534_v18  ;;  %v1535_v28 = vunpack.i.l.bf16 %v1534_v18 }
 0x12b   : > { %v397_v22 = vrot.slane %v1541_v16, 4  ;;  %v357_v23 = vrot.slane %v1540_v17, 4 }
 0x12c   : > { %v409_v41 = vrot.slane %v1536_v27, 4  ;;  %v369_v42 = vrot.slane %v1535_v28, 4 }
 0x12d   : > { %v398_v29 = vsel %vm351_vm2, %v397_v22, %v1556_v24  ;;  %v358_v30 = vsel %vm351_vm2, %v357_v23, %v1555_v25 }
 0x12e   : > { %v402_v39 = vperm.slane %v398_v29, %v2006_v26  ;;  %v362_v40 = vperm.slane %v358_v30, %v2006_v26 }
 0x130   : > { %v1544_v31 = vpop.permute.xlu1 %1543  ;;  %v415_v52 = vrot.slane %v402_v39, 4  ;;  %v375_v53 = vrot.slane %v362_v40, 4 }
 0x131   : > { %v1546_v32 = vunpack.i.h.bf16 %v1544_v31  ;;  %v1545_v33 = vunpack.i.l.bf16 %v1544_v31  ;;  %v1559_v34 = vpop.permute.xlu0 %1558 }
 0x132   : > { %v1561_v37 = vunpack.i.h.bf16 %v1559_v34  ;;  %v1560_v38 = vunpack.i.l.bf16 %v1559_v34 }
 0x133   : > { %v370_v47 = vsel %vm351_vm2, %v369_v42, %v1545_v33  ;;  %v410_v48 = vsel %vm351_vm2, %v409_v41, %v1546_v32 }
 0x134   : > { %v391_v45 = vrot.slane %v1561_v37, 4  ;;  %v350_v46 = vrot.slane %v1560_v38, 4  ;;  %v374_v58 = vperm.slane %v370_v47, %v2006_v26  ;;  %v414_v59 = vperm.slane %v410_v48, %v2006_v26 }
 0x136   : > { %v392_v50 = vsel %vm351_vm2, %v391_v45, %v305_v12  ;;  %v352_v51 = vsel %vm351_vm2, %v350_v46, %v304_v11  ;;  %v381_v5 = vrot.slane %v374_v58, 4  ;;  %v421_v6 = vrot.slane %v414_v59, 4 }
 0x137   : > { %v396_v54 = vperm.slane %v392_v50, %v2006_v26  ;;  %v356_v55 = vperm.slane %v352_v51, %v2006_v26 }
 0x138   : > { %v1564_v60 = vpop.permute.xlu1 %1563 }
 0x139   : > { %v416_v61 = vsel %vm351_vm2, %v415_v52, %v396_v54  ;;  %v376_v62 = vsel %vm351_vm2, %v375_v53, %v356_v55  ;;  %v1566_v63 = vunpack.i.h.bf16 %v1564_v60  ;;  %v1565_v0 = vunpack.i.l.bf16 %v1564_v60 }
 0x13a   : > { %v420_v1 = vperm.slane %v416_v61, %v2014_v49  ;;  %v380_v2 = vperm.slane %v376_v62, %v2014_v49 }
 0x13b   : > { %v404_v3 = vsel %vm351_vm2, %v403_v56, %v1566_v63  ;;  %v364_v4 = vsel %vm351_vm2, %v363_v57, %v1565_v0 }
 0x13c   : > { %v408_v7 = vperm.slane %v404_v3, %v2006_v26  ;;  %v368_v8 = vperm.slane %v364_v4, %v2006_v26  ;;  %v429_v11 = vrot.slane %v420_v1, 4  ;;  %v389_v12 = vrot.slane %v380_v2, 4 }
 0x13e   : > { %v382_v9 = vsel %vm351_vm2, %v381_v5, %v368_v8  ;;  %v422_v10 = vsel %vm351_vm2, %v421_v6, %v408_v7 }
 0x13f   : > { %v386_v13 = vperm.slane %v382_v9, %v2014_v49  ;;  %v426_v14 = vperm.slane %v422_v10, %v2014_v49 }
 0x141   : > { %v387_v15 = vrot.slane %v386_v13, 4  ;;  %v2035_v16 = vsel %vm351_vm2, %v386_v13, %v389_v12  ;;  %v427_v17 = vrot.slane %v426_v14, 4  ;;  %v2038_v18 = vsel %vm351_vm2, %v426_v14, %v429_v11 }
 0x142   : > { %v439_v19 = vrot.slane %v2035_v16, 6  ;;  %v440_v20 = vrot.slane %v2038_v18, 6 }
 0x143   : > { %v2043_v21 = vsel %vm351_vm2, %v387_v15, %v380_v2  ;;  %v2046_v22 = vsel %vm351_vm2, %v427_v17, %v420_v1 }
 0x144   : > { %v441_v23 = vsel %vm435_vm3, %v439_v19, %v440_v20  ;;  %v449_v24 = vsel %vm435_vm3, -inf, %v439_v19  ;;  %v451_v25 = vsel %vm435_vm3, %v440_v20, -inf  ;;  %v436_v27 = vrot.slane %v2043_v21, 6 }
 0x145   : > { %v462_v28 = vrot.slane %v449_v24, 1  ;;  %v463_v29 = vrot.slane %v441_v23, 1  ;;  %v465_v30 = vrot.slane %v451_v25, 1  ;;  %v481_v31 = vrot.slane %v449_v24, 2 }
 0x146   : > { %v482_v32 = vrot.slane %v441_v23, 2  ;;  %v484_v33 = vrot.slane %v451_v25, 2  ;;  %v500_v34 = vrot.slane %v449_v24, 3  ;;  %v501_v35 = vrot.slane %v441_v23, 3 }
 0x147   : > { %v464_v36 = vsel %vm456_vm4, %v462_v28, %v463_v29  ;;  %v466_v37 = vsel %vm456_vm4, %v463_v29, %v465_v30  ;;  %v503_v38 = vrot.slane %v451_v25, 3  ;;  %v518_v39 = vrot.slane %v449_v24, 4 }
 0x148   : > { %v473_v40 = vmax.f32 %v449_v24, %v464_v36  ;;  %v474_v41 = vmax.f32 %v441_v23, %v466_v37  ;;  %v483_v42 = vsel %vm475_vm5, %v481_v31, %v482_v32  ;;  %v485_v43 = vsel %vm475_vm5, %v482_v32, %v484_v33 }
 0x149   : > { %v502_v44 = vsel %vm494_vm6, %v500_v34, %v501_v35  ;;  %v504_v45 = vsel %vm494_vm6, %v501_v35, %v503_v38  ;;  %v519_v46 = vrot.slane %v441_v23, 4  ;;  %v521_v47 = vrot.slane %v451_v25, 4 }
 0x14a   : > { %v492_v48 = vmax.f32 %v473_v40, %v483_v42  ;;  %v493_v50 = vmax.f32 %v474_v41, %v485_v43  ;;  %v437_v51 = vrot.slane %v2046_v22, 6  ;;  %v448_v52 = vsel %vm435_vm3, -inf, %v436_v27 }
 0x14b   : > { %v520_v53 = vsel %vm259_vm0, %v518_v39, %v519_v46  ;;  %v522_v54 = vsel %vm259_vm0, %v519_v46, %v521_v47  ;;  %v457_v55 = vrot.slane %v448_v52, 1  ;;  %v476_v56 = vrot.slane %v448_v52, 2 }
 0x14c   : > { %v511_v57 = vmax.f32 %v492_v48, %v502_v44  ;;  %v512_v58 = vmax.f32 %v493_v50, %v504_v45  ;;  %v438_v59 = vsel %vm435_vm3, %v436_v27, %v437_v51  ;;  %v450_v60 = vsel %vm435_vm3, %v437_v51, -inf }
 0x14d   : > { %v458_v61 = vrot.slane %v438_v59, 1  ;;  %v460_v62 = vrot.slane %v450_v60, 1  ;;  %v477_v63 = vrot.slane %v438_v59, 2  ;;  %v479_v0 = vrot.slane %v450_v60, 2 }
 0x14e   : > { %v529_v1 = vmax.f32 %v511_v57, %v520_v53  ;;  %v530_v2 = vmax.f32 %v512_v58, %v522_v54  ;;  %v495_v3 = vrot.slane %v448_v52, 3  ;;  %v496_v7 = vrot.slane %v438_v59, 3 }
 0x14f   : > { %v459_v4 = vsel %vm456_vm4, %v457_v55, %v458_v61  ;;  %v461_v5 = vsel %vm456_vm4, %v458_v61, %v460_v62  ;;  %v478_v6 = vsel %vm475_vm5, %v476_v56, %v477_v63  ;;  %v480_v11 = vsel %vm475_vm5, %v477_v63, %v479_v0 }
 0x150   : > { %v1572_v8 = vpack.i.bf16 %v530_v2, %v529_v1  ;;  %v471_v9 = vmax.f32 %v448_v52, %v459_v4  ;;  %v472_v10 = vmax.f32 %v438_v59, %v461_v5  ;;  %v498_v12 = vrot.slane %v450_v60, 3 }
 0x151   : > { %v513_v13 = vrot.slane %v448_v52, 4  ;;  %v514_v14 = vrot.slane %v438_v59, 4  ;;  %v516_v15 = vrot.slane %v450_v60, 4  ;;  %v497_v20 = vsel %vm494_vm6, %v495_v3, %v496_v7 }
 0x152   : > { %1573 = vrot.lane.b32.xlu0 %v1572_v8, %s1860_s10  ;;  %v490_v17 = vmax.f32 %v471_v9, %v478_v6  ;;  %v491_v19 = vmax.f32 %v472_v10, %v480_v11  ;;  %v499_v23 = vsel %vm494_vm6, %v496_v7, %v498_v12 }
 0x153   : > { %v515_v27 = vsel %vm259_vm0, %v513_v13, %v514_v14  ;;  %v517_v28 = vsel %vm259_vm0, %v514_v14, %v516_v15  ;;  %v1015_v15 = vrot.slane %v2035_v16, 4 }
 0x154   : > { %v509_v24 = vmax.f32 %v490_v17, %v497_v20  ;;  %v510_v25 = vmax.f32 %v491_v19, %v499_v23  ;;  %v1127_v17 = vrot.slane %v2038_v18, 4 }
 0x156   : > { %v527_v29 = vmax.f32 %v509_v24, %v515_v27  ;;  %v528_v30 = vmax.f32 %v510_v25, %v517_v28  ;;  %v1003_v25 = vrot.slane %v2043_v21, 4  ;;  %v1115_v27 = vrot.slane %v2046_v22, 4 }
 0x158   : > { %v1567_v31 = vpack.i.bf16 %v528_v30, %v527_v29 }
 0x15a   : > { %1568 = vrot.lane.b32.xlu2 %v1567_v31, %s1860_s10 }
 0x1b4   : > { %v1569_v32 = vpop.permute.xlu2 %1568 }
 0x1b5   : > { %v1571_v33 = vunpack.i.h.bf16 %v1569_v32  ;;  %v1570_v34 = vunpack.i.l.bf16 %v1569_v32 }
 0x1b7   : > { %v549_v35 = vsel %vm547_vm7, -inf, %v1571_v33  ;;  %v548_v36 = vsel %vm547_vm7, -inf, %v1570_v34 }
 0x1b8   : > { %v554_v37 = vsel %vm552_vm8, %v549_v35, -inf  ;;  %v553_v38 = vsel %vm552_vm8, %v548_v36, -inf }
 0x1b9   : > { %v1587_v39 = vpack.i.bf16 %v554_v37, %v553_v38 }
 0x1bb   : > { %1588 = vrot.lane.b32.xlu0 %v1587_v39, %s1861_s12  ;;  %1578 = vrot.lane.b32.xlu1 %v1587_v39, %s1862_s14 }
 0x1c4   : > { %v1574_v40 = vpop.permute.xlu0 %1573 }
 0x1c5   : > { %v1576_v41 = vunpack.i.h.bf16 %v1574_v40  ;;  %v1575_v42 = vunpack.i.l.bf16 %v1574_v40 }
 0x1c7   : > { %v551_v43 = vsel %vm547_vm7, -inf, %v1576_v41  ;;  %v550_v44 = vsel %vm547_vm7, -inf, %v1575_v42 }
 0x1c8   : > { %v556_v45 = vsel %vm552_vm8, %v551_v43, -inf  ;;  %v555_v46 = vsel %vm552_vm8, %v550_v44, -inf }
 0x1c9   : > { %v1582_v47 = vpack.i.bf16 %v556_v45, %v555_v46 }
 0x1cb   : > { %1583 = vrot.lane.b32.xlu2 %v1582_v47, %s1862_s14  ;;  %1603 = vrot.lane.b32.xlu0 %v1582_v47, %s1863_s13 }
 0x1cc   : > { %1593 = vrot.lane.b32.xlu1 %v1582_v47, %s1861_s12 }
 0x1d3   : > { %1598 = vrot.lane.b32.xlu2 %v1587_v39, %s1863_s13 }
 0x1d4   : > { %1608 = vrot.lane.b32.xlu1 %v1587_v39, %s1864_s15 }
 0x1db   : > { %1613 = vrot.lane.b32.xlu2 %v1582_v47, %s1864_s15 }
 0x225   : > { %v1584_v48 = vpop.permute.xlu2 %1583 }
 0x226   : > { %v1586_v53 = vunpack.i.h.bf16 %v1584_v48  ;;  %v1585_v54 = vunpack.i.l.bf16 %v1584_v48 }
 0x228   : > { %v576_v59 = vmax.f32 %v556_v45, %v1586_v53  ;;  %v575_v60 = vmax.f32 %v555_v46, %v1585_v54 }
 0x22d   : > { %v1589_v50 = vpop.permute.xlu0 %1588  ;;  %v1579_v51 = vpop.permute.xlu1 %1578 }
 0x22e   : > { %v1599_v52 = vpop.permute.xlu2 %1598  ;;  %v1580_v55 = vunpack.i.l.bf16 %v1579_v51  ;;  %v1581_v56 = vunpack.i.h.bf16 %v1579_v51  ;;  %v1590_v5 = vunpack.i.l.bf16 %v1589_v50  ;;  %v1591_v12 = vunpack.i.h.bf16 %v1589_v50 }
 0x22f   : > { %v1600_v7 = vunpack.i.l.bf16 %v1599_v52  ;;  %v1601_v13 = vunpack.i.h.bf16 %v1599_v52 }
 0x230   : > { %v573_v63 = vmax.f32 %v553_v38, %v1580_v55  ;;  %v574_v6 = vmax.f32 %v554_v37, %v1581_v56 }
 0x232   : > { %v589_v14 = vmax.f32 %v573_v63, %v1590_v5  ;;  %v590_v23 = vmax.f32 %v574_v6, %v1591_v12 }
 0x234   : > { %v605_v24 = vmax.f32 %v589_v14, %v1600_v7  ;;  %v606_v33 = vmax.f32 %v590_v23, %v1601_v13 }
 0x236   : > { %v1614_v0 = vpop.permute.xlu2 %1613 }
 0x237   : > { %v1616_v8 = vunpack.i.h.bf16 %v1614_v0  ;;  %v1615_v9 = vunpack.i.l.bf16 %v1614_v0 }
 0x23d   : > { %v1604_v57 = vpop.permute.xlu0 %1603 }
 0x23e   : > { %v1594_v58 = vpop.permute.xlu1 %1593  ;;  %v1606_v1 = vunpack.i.h.bf16 %v1604_v57  ;;  %v1605_v2 = vunpack.i.l.bf16 %v1604_v57 }
 0x23f   : > { %v1596_v61 = vunpack.i.h.bf16 %v1594_v58  ;;  %v1595_v62 = vunpack.i.l.bf16 %v1594_v58 }
 0x241   : > { %v592_v3 = vmax.f32 %v576_v59, %v1596_v61  ;;  %v591_v4 = vmax.f32 %v575_v60, %v1595_v62 }
 0x243   : > { %v608_v10 = vmax.f32 %v592_v3, %v1606_v1  ;;  %v607_v11 = vmax.f32 %v591_v4, %v1605_v2 }
 0x245   : > { %v624_v19 = vmax.f32 %v608_v10, %v1616_v8  ;;  %v623_v20 = vmax.f32 %v607_v11, %v1615_v9 }
 0x246   : > { %v1609_v28 = vpop.permute.xlu1 %1608 }
 0x247   : > { %v633_v29 = vrot.slane %v624_v19, 6  ;;  %v1125_v30 = vrot.slane %v624_v19, 4  ;;  %v1128_v31 = vsel %vm351_vm2, %v624_v19, %v1127_v17  ;;  %v632_v32 = vrot.slane %v623_v20, 6 }
 0x248   : > { %v1013_v34 = vrot.slane %v623_v20, 4  ;;  %v1016_v35 = vsel %vm351_vm2, %v623_v20, %v1015_v15  ;;  %v1611_v36 = vunpack.i.h.bf16 %v1609_v28  ;;  %v2098_v38 = vperm.slane %v1128_v31, %v2006_v26 }
 0x249   : > { %v644_v37 = vsel %vm435_vm3, %v633_v29, -inf  ;;  %v634_v39 = vsel %vm435_vm3, %v632_v32, %v633_v29  ;;  %v642_v40 = vsel %vm435_vm3, -inf, %v632_v32  ;;  %v2104_v41 = vsel %vm351_vm2, %v1125_v30, %v2038_v18 }
 0x24a   : > { %v2108_v42 = vsel %vm351_vm2, %v1013_v34, %v2035_v16  ;;  %v1610_v43 = vunpack.i.l.bf16 %v1609_v28  ;;  %v622_v44 = vmax.f32 %v606_v33, %v1611_v36  ;;  %v2111_v45 = vperm.slane %v1016_v35, %v2006_v26 }
 0x24b   : > { %v654_v46 = vrot.slane %v642_v40, 1  ;;  %v655_v47 = vrot.slane %v634_v39, 1  ;;  %v657_v48 = vrot.slane %v644_v37, 1  ;;  %v672_v55 = vrot.slane %v642_v40, 2 }
 0x24c   : > { %v621_v50 = vmax.f32 %v605_v24, %v1610_v43  ;;  %v630_v51 = vrot.slane %v622_v44, 6  ;;  %v1113_v52 = vrot.slane %v622_v44, 4  ;;  %v1116_v53 = vsel %vm351_vm2, %v622_v44, %v1115_v27 }
 0x24d   : > { %v2115_v18 = vperm.slane %v1116_v53, %v2006_v26  ;;  %v656_v54 = vsel %vm456_vm4, %v654_v46, %v655_v47  ;;  %v658_v16 = vsel %vm456_vm4, %v655_v47, %v657_v48  ;;  %v673_v63 = vrot.slane %v634_v39, 2 }
 0x24e   : > { %v629_v56 = vrot.slane %v621_v50, 6  ;;  %v2120_v57 = vsel %vm435_vm3, %v630_v51, -inf  ;;  %v1001_v58 = vrot.slane %v621_v50, 4  ;;  %v1004_v59 = vsel %vm351_vm2, %v621_v50, %v1003_v25 }
 0x24f   : > { %v652_v60 = vrot.slane %v2120_v57, 1  ;;  %v2125_v61 = vperm.slane %v1004_v59, %v2006_v26  ;;  %v1114_v62 = vsel %vm351_vm2, %v1113_v52, %v2046_v22  ;;  %v670_v1 = vrot.slane %v2120_v57, 2 }
 0x250   : > { %v641_v0 = vsel %vm435_vm3, -inf, %v629_v56  ;;  %v1002_v2 = vsel %vm351_vm2, %v1001_v58, %v2043_v21  ;;  %v2134_v3 = vperm.slane %v1114_v62, %v2006_v26  ;;  %v631_v4 = vsel %vm435_vm3, %v629_v56, %v630_v51 }
 0x251   : > { %v649_v5 = vrot.slane %v641_v0, 1  ;;  %v1008_v6 = vperm.slane %v1002_v2, %v2006_v26  ;;  %v1063_v7 = vrot.slane %v2125_v61, 4  ;;  %v1175_v8 = vrot.slane %v2115_v18, 4 }
 0x252   : > { %v1163_v22 = vrot.slane %v2134_v3, 4  ;;  %v665_v9 = vmax.f32 %v642_v40, %v656_v54  ;;  %v666_v10 = vmax.f32 %v634_v39, %v658_v16  ;;  %v674_v11 = vsel %vm475_vm5, %v672_v55, %v673_v63 }
 0x253   : > { %v675_v12 = vrot.slane %v644_v37, 2  ;;  %v690_v21 = vrot.slane %v642_v40, 3  ;;  %v691_v13 = vrot.slane %v634_v39, 3  ;;  %v693_v15 = vrot.slane %v644_v37, 3 }
 0x254   : > { %v683_v14 = vmax.f32 %v665_v9, %v674_v11  ;;  %v708_v17 = vrot.slane %v642_v40, 4  ;;  %v709_v19 = vrot.slane %v634_v39, 4  ;;  %v711_v24 = vrot.slane %v644_v37, 4 }
 0x255   : > { %v676_v20 = vsel %vm475_vm5, %v673_v63, %v675_v12  ;;  %v692_v23 = vsel %vm494_vm6, %v690_v21, %v691_v13  ;;  %v650_v25 = vrot.slane %v631_v4, 1  ;;  %v694_v28 = vsel %vm494_vm6, %v691_v13, %v693_v15 }
 0x256   : > { %v684_v27 = vmax.f32 %v666_v10, %v676_v20  ;;  %v701_v29 = vmax.f32 %v683_v14, %v692_v23  ;;  %v710_v30 = vsel %vm259_vm0, %v708_v17, %v709_v19  ;;  %v712_v31 = vsel %vm259_vm0, %v709_v19, %v711_v24 }
 0x257   : > { %v651_v32 = vsel %vm456_vm4, %v649_v5, %v650_v25  ;;  %v653_v33 = vsel %vm456_vm4, %v650_v25, %v652_v60  ;;  %v667_v34 = vrot.slane %v641_v0, 2  ;;  %v668_v43 = vrot.slane %v631_v4, 2 }
 0x258   : > { %v702_v35 = vmax.f32 %v684_v27, %v694_v28  ;;  %v719_v36 = vmax.f32 %v701_v29, %v710_v30  ;;  %v663_v39 = vmax.f32 %v641_v0, %v651_v32  ;;  %v664_v40 = vmax.f32 %v631_v4, %v653_v33 }
 0x259   : > { %v685_v37 = vrot.slane %v641_v0, 3  ;;  %v686_v44 = vrot.slane %v631_v4, 3  ;;  %v688_v46 = vrot.slane %v2120_v57, 3  ;;  %v703_v48 = vrot.slane %v641_v0, 4 }
 0x25a   : > { %v720_v47 = vmax.f32 %v702_v35, %v712_v31  ;;  %v704_v50 = vrot.slane %v631_v4, 4  ;;  %v706_v51 = vrot.slane %v2120_v57, 4  ;;  %v1051_v52 = vrot.slane %v1008_v6, 4 }
 0x25b   : > { %v669_v53 = vsel %vm475_vm5, %v667_v34, %v668_v43  ;;  %v671_v54 = vsel %vm475_vm5, %v668_v43, %v670_v1  ;;  %v687_v16 = vsel %vm494_vm6, %v685_v37, %v686_v44  ;;  %v689_v59 = vsel %vm494_vm6, %v686_v44, %v688_v46 }
 0x25c   : > { %v1622_v55 = vpack.i.bf16 %v720_v47, %v719_v36  ;;  %v681_v56 = vmax.f32 %v663_v39, %v669_v53  ;;  %v682_v58 = vmax.f32 %v664_v40, %v671_v54  ;;  %v705_v60 = vsel %vm259_vm0, %v703_v48, %v704_v50 }
 0x25d   : > { %v1020_v62 = vperm.slane %v2108_v42, %v2006_v26  ;;  %v1132_v57 = vperm.slane %v2104_v41, %v2006_v26  ;;  %v2162_v63 = vsel %vm351_vm2, %v2111_v45, %v1063_v7  ;;  %v707_v2 = vsel %vm259_vm0, %v704_v50, %v706_v51 }
 0x25e   : > { %1623 = vrot.lane.b32.xlu1 %v1622_v55, %s1860_s10  ;;  %v699_v0 = vmax.f32 %v681_v56, %v687_v16  ;;  %v700_v1 = vmax.f32 %v682_v58, %v689_v59  ;;  %v2168_v4 = vsel %vm351_vm2, %v2098_v38, %v1175_v8  ;;  %v1061_v8 = vrot.slane %v2111_v45, 4 }
 0x25f   : > { %v2171_v5 = vsel %vm351_vm2, %v1020_v62, %v1051_v52  ;;  %v2174_v42 = vsel %vm351_vm2, %v1132_v57, %v1163_v22  ;;  %v1049_v41 = vrot.slane %v1020_v62, 4  ;;  %v1161_v9 = vrot.slane %v1132_v57, 4 }
 0x260   : > { %v717_v7 = vmax.f32 %v699_v0, %v705_v60  ;;  %v718_v10 = vmax.f32 %v700_v1, %v707_v2  ;;  %v2186_v13 = vsel %vm351_vm2, %v1061_v8, %v2125_v61  ;;  %v1173_v22 = vrot.slane %v2098_v38, 4 }
 0x261   : > { %v2177_v11 = vsel %vm351_vm2, %v1049_v41, %v1008_v6  ;;  %v2181_v12 = vsel %vm351_vm2, %v1161_v9, %v2134_v3 }
 0x262   : > { %v1617_v21 = vpack.i.bf16 %v718_v10, %v717_v7  ;;  %v2192_v14 = vsel %vm351_vm2, %v1173_v22, %v2115_v18 }
 0x264   : > { %1618 = vrot.lane.b32.xlu0 %v1617_v21, %s1860_s10 }
 0x2d0   : > { %v1624_v6 = vpop.permute.xlu1 %1623 }
 0x2d1   : > { %v1626_v15 = vunpack.i.h.bf16 %v1624_v6  ;;  %v1625_v17 = vunpack.i.l.bf16 %v1624_v6 }
 0x2d3   : > { %v740_v3 = vsel %vm547_vm7, -inf, %v1626_v15  ;;  %v739_v45 = vsel %vm547_vm7, -inf, %v1625_v17 }
 0x2d4   : > { %v744_v19 = vsel %vm552_vm8, %v740_v3, -inf  ;;  %v743_v61 = vsel %vm552_vm8, %v739_v45, -inf }
 0x2d5   : > { %v1632_v20 = vpack.i.bf16 %v744_v19, %v743_v61 }
 0x2d6   : > { %v1619_v23 = vpop.permute.xlu0 %1618 }
 0x2d7   : > { %v1621_v38 = vunpack.i.h.bf16 %v1619_v23  ;;  %v1620_v24 = vunpack.i.l.bf16 %v1619_v23  ;;  %1633 = vrot.lane.b32.xlu0 %v1632_v20, %s1862_s14 }
 0x2d9   : > { %v738_v18 = vsel %vm547_vm7, -inf, %v1621_v38  ;;  %v737_v25 = vsel %vm547_vm7, -inf, %v1620_v24 }
 0x2da   : > { %v742_v27 = vsel %vm552_vm8, %v738_v18, -inf  ;;  %v741_v28 = vsel %vm552_vm8, %v737_v25, -inf }
 0x2db   : > { %v1637_v29 = vpack.i.bf16 %v742_v27, %v741_v28 }
 0x2dd   : > { %1638 = vrot.lane.b32.xlu1 %v1637_v29, %s1861_s12  ;;  %1628 = vrot.lane.b32.xlu2 %v1637_v29, %s1862_s14 }
 0x2df   : > { %1648 = vrot.lane.b32.xlu0 %v1637_v29, %s1863_s13 }
 0x2e5   : > { %1653 = vrot.lane.b32.xlu1 %v1632_v20, %s1863_s13  ;;  %1643 = vrot.lane.b32.xlu2 %v1632_v20, %s1861_s12 }
 0x2e7   : > { %1663 = vrot.lane.b32.xlu0 %v1632_v20, %s1864_s15 }
 0x2ed   : > { %1658 = vrot.lane.b32.xlu2 %v1637_v29, %s1864_s15 }
 0x337   : > { %v1629_v30 = vpop.permute.xlu2 %1628 }
 0x338   : > { %v1631_v33 = vunpack.i.h.bf16 %v1629_v30  ;;  %v1630_v34 = vunpack.i.l.bf16 %v1629_v30 }
 0x33a   : > { %v762_v36 = vmax.f32 %v742_v27, %v1631_v33  ;;  %v761_v39 = vmax.f32 %v741_v28, %v1630_v34 }
 0x33f   : > { %v1644_v31 = vpop.permute.xlu2 %1643 }
 0x340   : > { %v1646_v62 = vunpack.i.h.bf16 %v1644_v31  ;;  %v1645_v57 = vunpack.i.l.bf16 %v1644_v31 }
 0x347   : > { %v1659_v37 = vpop.permute.xlu2 %1658 }
 0x348   : > { %v1661_v53 = vunpack.i.h.bf16 %v1659_v37  ;;  %v1660_v54 = vunpack.i.l.bf16 %v1659_v37 }
 0x349   : > { %v1634_v32 = vpop.permute.xlu0 %1633 }
 0x34a   : > { %v1636_v44 = vunpack.i.h.bf16 %v1634_v32  ;;  %v1635_v46 = vunpack.i.l.bf16 %v1634_v32 }
 0x34c   : > { %v764_v56 = vmax.f32 %v744_v19, %v1636_v44  ;;  %v763_v58 = vmax.f32 %v743_v61, %v1635_v46 }
 0x34e   : > { %v779_v7 = vmax.f32 %v763_v58, %v1645_v57  ;;  %v780_v10 = vmax.f32 %v764_v56, %v1646_v62 }
 0x34f   : > { %v1639_v35 = vpop.permute.xlu1 %1638 }
 0x350   : > { %v1641_v40 = vunpack.i.h.bf16 %v1639_v35  ;;  %v1640_v43 = vunpack.i.l.bf16 %v1639_v35 }
 0x351   : > { %v1649_v47 = vpop.permute.xlu0 %1648 }
 0x352   : > { %v777_v48 = vmax.f32 %v761_v39, %v1640_v43  ;;  %v778_v50 = vmax.f32 %v762_v36, %v1641_v40  ;;  %v1651_v51 = vunpack.i.h.bf16 %v1649_v47  ;;  %v1650_v52 = vunpack.i.l.bf16 %v1649_v47 }
 0x354   : > { %v793_v16 = vmax.f32 %v777_v48, %v1650_v52  ;;  %v794_v55 = vmax.f32 %v778_v50, %v1651_v51 }
 0x356   : > { %v2210_v59 = vmax.f32 %v793_v16, %v1660_v54  ;;  %v2212_v60 = vmax.f32 %v794_v55, %v1661_v53 }
 0x357   : > { %v1654_v0 = vpop.permute.xlu1 %1653 }
 0x358   : > { %v817_v1 = vrot.slane %v2210_v59, 6  ;;  %v818_v2 = vrot.slane %v2212_v60, 6  ;;  %v1656_v41 = vunpack.i.h.bf16 %v1654_v0  ;;  %v1655_v9 = vunpack.i.l.bf16 %v1654_v0 }
 0x359   : > { %v1664_v8 = vpop.permute.xlu0 %1663 }
 0x35a   : > { %v2217_v21 = vsel %vm435_vm3, %v817_v1, %v818_v2  ;;  %v2220_v22 = vsel %vm435_vm3, -inf, %v817_v1  ;;  %v831_v6 = vsel %vm435_vm3, %v818_v2, -inf  ;;  %v1666_v15 = vunpack.i.h.bf16 %v1664_v8 }
 0x35b   : > { %v840_v17 = vrot.slane %v831_v6, 1  ;;  %v795_v3 = vmax.f32 %v779_v7, %v1655_v9  ;;  %v796_v45 = vmax.f32 %v780_v10, %v1656_v41  ;;  %v1665_v19 = vunpack.i.l.bf16 %v1664_v8 }
 0x35c   : > { %v838_v61 = vrot.slane %v2217_v21, 1  ;;  %v856_v20 = vrot.slane %v2217_v21, 2  ;;  %v858_v23 = vrot.slane %v831_v6, 2  ;;  %v837_v25 = vrot.slane %v2220_v22, 1 }
 0x35d   : > { %v2225_v38 = vmax.f32 %v795_v3, %v1665_v19  ;;  %v2227_v24 = vmax.f32 %v796_v45, %v1666_v15  ;;  %v874_v29 = vrot.slane %v2217_v21, 3  ;;  %v876_v30 = vrot.slane %v831_v6, 3 }
 0x35e   : > { %v841_v18 = vsel %vm456_vm4, %v838_v61, %v840_v17  ;;  %v859_v32 = vsel %vm475_vm5, %v856_v20, %v858_v23  ;;  %v892_v33 = vrot.slane %v2217_v21, 4  ;;  %v894_v34 = vrot.slane %v831_v6, 4 }
 0x35f   : > { %v820_v27 = vrot.slane %v2225_v38, 6  ;;  %v821_v28 = vrot.slane %v2227_v24, 6  ;;  %v852_v31 = vmax.f32 %v2217_v21, %v841_v18  ;;  %v839_v40 = vsel %vm456_vm4, %v837_v25, %v838_v61 }
 0x360   : > { %v877_v53 = vsel %vm494_vm6, %v874_v29, %v876_v30  ;;  %v851_v16 = vmax.f32 %v2220_v22, %v839_v40  ;;  %v855_v1 = vrot.slane %v2220_v22, 2  ;;  %v873_v7 = vrot.slane %v2220_v22, 3 }
 0x361   : > { %v822_v35 = vsel %vm435_vm3, %v820_v27, %v821_v28  ;;  %v830_v36 = vsel %vm435_vm3, -inf, %v820_v27  ;;  %v832_v39 = vsel %vm435_vm3, %v821_v28, -inf  ;;  %v870_v48 = vmax.f32 %v852_v31, %v859_v32 }
 0x362   : > { %v842_v43 = vrot.slane %v830_v36, 1  ;;  %v845_v37 = vrot.slane %v832_v39, 1  ;;  %v863_v44 = vrot.slane %v832_v39, 2  ;;  %v843_v46 = vrot.slane %v822_v35, 1 }
 0x363   : > { %v861_v47 = vrot.slane %v822_v35, 2  ;;  %v879_v50 = vrot.slane %v822_v35, 3  ;;  %v881_v51 = vrot.slane %v832_v39, 3  ;;  %v897_v58 = vrot.slane %v822_v35, 4 }
 0x364   : > { %v846_v52 = vsel %vm456_vm4, %v843_v46, %v845_v37  ;;  %v844_v54 = vsel %vm456_vm4, %v842_v43, %v843_v46  ;;  %v899_v62 = vrot.slane %v832_v39, 4  ;;  %v860_v2 = vrot.slane %v830_v36, 2 }
 0x365   : > { %v854_v55 = vmax.f32 %v822_v35, %v846_v52  ;;  %v864_v56 = vsel %vm475_vm5, %v861_v47, %v863_v44  ;;  %v882_v57 = vsel %vm494_vm6, %v879_v50, %v881_v51  ;;  %v853_v0 = vmax.f32 %v830_v36, %v844_v54 }
 0x366   : > { %v888_v9 = vmax.f32 %v870_v48, %v877_v53  ;;  %v878_v10 = vrot.slane %v830_v36, 3  ;;  %v857_v8 = vsel %vm475_vm5, %v855_v1, %v856_v20  ;;  %v862_v21 = vsel %vm475_vm5, %v860_v2, %v861_v47 }
 0x367   : > { %v872_v41 = vmax.f32 %v854_v55, %v864_v56  ;;  %v891_v6 = vrot.slane %v2220_v22, 4  ;;  %v896_v15 = vrot.slane %v830_v36, 4  ;;  %v869_v3 = vmax.f32 %v851_v16, %v857_v8 }
 0x368   : > { %v871_v45 = vmax.f32 %v853_v0, %v862_v21  ;;  %v895_v19 = vsel %vm259_vm0, %v892_v33, %v894_v34  ;;  %v900_v61 = vsel %vm259_vm0, %v897_v58, %v899_v62  ;;  %v875_v23 = vsel %vm494_vm6, %v873_v7, %v874_v29 }
 0x369   : > { %v890_v17 = vmax.f32 %v872_v41, %v882_v57  ;;  %v880_v18 = vsel %vm494_vm6, %v878_v10, %v879_v50  ;;  %v906_v25 = vmax.f32 %v888_v9, %v895_v19  ;;  %v887_v28 = vmax.f32 %v869_v3, %v875_v23 }
 0x36a   : > { %v889_v20 = vmax.f32 %v871_v45, %v880_v18  ;;  %v893_v30 = vsel %vm259_vm0, %v891_v6, %v892_v33  ;;  %v898_v22 = vsel %vm259_vm0, %v896_v15, %v897_v58  ;;  %v2278_v62 = vperm.slane %v2171_v5, %v2014_v49 }
 0x36b   : > { %v908_v27 = vmax.f32 %v890_v17, %v900_v61  ;;  %v905_v32 = vmax.f32 %v887_v28, %v893_v30  ;;  %v2282_v1 = vperm.slane %v2174_v42, %v2014_v49  ;;  %v2287_v8 = vperm.slane %v2177_v11, %v2014_v49 }
 0x36c   : > { %v907_v35 = vmax.f32 %v889_v20, %v898_v22  ;;  %v1103_v10 = vrot.slane %v2278_v62, 4  ;;  %v2291_v5 = vperm.slane %v2162_v63, %v2014_v49  ;;  %v2295_v21 = vperm.slane %v2168_v4, %v2014_v49 }
 0x36d   : > { %v1667_v31 = vpack.i.bf16 %v908_v27, %v906_v25  ;;  %v1215_v61 = vrot.slane %v2282_v1, 4  ;;  %v2300_v11 = vperm.slane %v2181_v12, %v2014_v49  ;;  %v1099_v28 = vrot.slane %v2287_v8, 4 }
 0x36e   : > { %v1672_v34 = vpack.i.bf16 %v907_v35, %v905_v32  ;;  %v1111_v20 = vrot.slane %v2291_v5, 4  ;;  %v1027_v35 = vrot.slane %v2210_v59, 4  ;;  %v2308_v12 = vperm.slane %v2186_v13, %v2014_v49 }
 0x36f   : > { %1668 = vrot.lane.b32.xlu1 %v1667_v31, %s1860_s10 }
 0x370   : > { %1673 = vrot.lane.b32.xlu2 %v1672_v34, %s1860_s10  ;;  %v1039_v34 = vrot.slane %v2225_v38, 4 }
 0x3ca   : > { %v1674_v36 = vpop.permute.xlu2 %1673 }
 0x3cb   : > { %v1676_v29 = vunpack.i.h.bf16 %v1674_v36  ;;  %v1675_v39 = vunpack.i.l.bf16 %v1674_v36  ;;  %v1223_v36 = vrot.slane %v2295_v21, 4 }
 0x3cd   : > { %v927_v40 = vsel %vm547_vm7, -inf, %v1676_v29  ;;  %v925_v43 = vsel %vm547_vm7, -inf, %v1675_v39 }
 0x3ce   : > { %v931_v37 = vsel %vm552_vm8, %v927_v40, -inf  ;;  %v929_v33 = vsel %vm552_vm8, %v925_v43, -inf }
 0x3cf   : > { %v1682_v44 = vpack.i.bf16 %v931_v37, %v929_v33 }
 0x3d1   : > { %1683 = vrot.lane.b32.xlu1 %v1682_v44, %s1862_s14 }
 0x3e1   : > { %v1669_v46 = vpop.permute.xlu1 %1668 }
 0x3e2   : > { %v1671_v47 = vunpack.i.h.bf16 %v1669_v46  ;;  %v1670_v48 = vunpack.i.l.bf16 %v1669_v46  ;;  %v1211_v46 = vrot.slane %v2300_v11, 4 }
 0x3e4   : > { %v928_v50 = vsel %vm547_vm7, -inf, %v1671_v47  ;;  %v926_v51 = vsel %vm547_vm7, -inf, %v1670_v48  ;;  %v2314_v47 = vperm.slane %v2192_v14, %v2014_v49 }
 0x3e5   : > { %v932_v52 = vsel %vm552_vm8, %v928_v50, -inf  ;;  %v930_v53 = vsel %vm552_vm8, %v926_v51, -inf }
 0x3e6   : > { %v1677_v54 = vpack.i.bf16 %v932_v52, %v930_v53 }
 0x3e8   : > { %1678 = vrot.lane.b32.xlu0 %v1677_v54, %s1862_s14  ;;  %1688 = vrot.lane.b32.xlu2 %v1677_v54, %s1861_s12 }
 0x3e9   : > { %1698 = vrot.lane.b32.xlu1 %v1677_v54, %s1863_s13 }
 0x3f0   : > { %1703 = vrot.lane.b32.xlu2 %v1682_v44, %s1863_s13  ;;  %1693 = vrot.lane.b32.xlu0 %v1682_v44, %s1861_s12 }
 0x3f1   : > { %1713 = vrot.lane.b32.xlu1 %v1682_v44, %s1864_s15 }
 0x3f8   : > { %1708 = vrot.lane.b32.xlu0 %v1677_v54, %s1864_s15 }
 0x442   : > { %v1689_v55 = vpop.permute.xlu2 %1688 }
 0x443   : > { %v1684_v16 = vpop.permute.xlu1 %1683  ;;  %v1691_v27 = vunpack.i.h.bf16 %v1689_v55  ;;  %v1690_v4 = vunpack.i.l.bf16 %v1689_v55 }
 0x444   : > { %v1686_v57 = vunpack.i.h.bf16 %v1684_v16  ;;  %v1685_v0 = vunpack.i.l.bf16 %v1684_v16 }
 0x446   : > { %v951_v42 = vmax.f32 %v931_v37, %v1686_v57  ;;  %v949_v6 = vmax.f32 %v929_v33, %v1685_v0 }
 0x44a   : > { %v1704_v2 = vpop.permute.xlu2 %1703 }
 0x44b   : > { %v1706_v3 = vunpack.i.h.bf16 %v1704_v2  ;;  %v1705_v45 = vunpack.i.l.bf16 %v1704_v2 }
 0x45a   : > { %v1679_v56 = vpop.permute.xlu0 %1678 }
 0x45b   : > { %v1699_v58 = vpop.permute.xlu1 %1698  ;;  %v1681_v41 = vunpack.i.h.bf16 %v1679_v56  ;;  %v1680_v9 = vunpack.i.l.bf16 %v1679_v56 }
 0x45c   : > { %v1701_v37 = vunpack.i.h.bf16 %v1699_v58  ;;  %v1700_v33 = vunpack.i.l.bf16 %v1699_v58 }
 0x45d   : > { %v952_v23 = vmax.f32 %v932_v52, %v1681_v41  ;;  %v950_v63 = vmax.f32 %v930_v53, %v1680_v9  ;;  %v1139_v9 = vrot.slane %v2212_v60, 4 }
 0x45f   : > { %v966_v29 = vmax.f32 %v950_v63, %v1690_v4  ;;  %v968_v39 = vmax.f32 %v952_v23, %v1691_v27 }
 0x461   : > { %v984_v55 = vmax.f32 %v968_v39, %v1701_v37  ;;  %v982_v56 = vmax.f32 %v966_v29, %v1700_v33 }
 0x462   : > { %v1694_v7 = vpop.permute.xlu0 %1693 }
 0x463   : > { %v1696_v15 = vunpack.i.h.bf16 %v1694_v7  ;;  %v1695_v17 = vunpack.i.l.bf16 %v1694_v7  ;;  %v1714_v19 = vpop.permute.xlu1 %1713  ;;  %v1151_v7 = vrot.slane %v2227_v24, 4 }
 0x464   : > { %v1716_v30 = vunpack.i.h.bf16 %v1714_v19  ;;  %v1715_v22 = vunpack.i.l.bf16 %v1714_v19 }
 0x465   : > { %v965_v18 = vmax.f32 %v949_v6, %v1695_v17  ;;  %v967_v25 = vmax.f32 %v951_v42, %v1696_v15 }
 0x467   : > { %v981_v31 = vmax.f32 %v965_v18, %v1705_v45  ;;  %v983_v32 = vmax.f32 %v967_v25, %v1706_v3 }
 0x469   : > { %v997_v40 = vmax.f32 %v981_v31, %v1715_v22  ;;  %v999_v43 = vmax.f32 %v983_v32, %v1716_v30 }
 0x46a   : > { %v1709_v44 = vpop.permute.xlu0 %1708 }
 0x46b   : > { %v1025_v48 = vrot.slane %v997_v40, 4  ;;  %v1028_v50 = vsel %vm351_vm2, %v997_v40, %v1027_v35  ;;  %v1037_v13 = vrot.slane %v999_v43, 4  ;;  %v1040_v51 = vsel %vm351_vm2, %v999_v43, %v1039_v34 }
 0x46c   : > { %v1036_v52 = vperm.slane %v1028_v50, %v2006_v26  ;;  %v1048_v53 = vperm.slane %v1040_v51, %v2006_v26  ;;  %v1711_v54 = vunpack.i.h.bf16 %v1709_v44  ;;  %v1710_v16 = vunpack.i.l.bf16 %v1709_v44 }
 0x46d   : > { %v1026_v58 = vsel %vm351_vm2, %v1025_v48, %v2210_v59  ;;  %v1038_v14 = vsel %vm351_vm2, %v1037_v13, %v2225_v38 }
 0x46e   : > { %v1032_v57 = vperm.slane %v1026_v58, %v2006_v26  ;;  %v1044_v0 = vperm.slane %v1038_v14, %v2006_v26  ;;  %v1085_v2 = vrot.slane %v1048_v53, 4  ;;  %v1087_v41 = vrot.slane %v1036_v52, 4 }
 0x46f   : > { %v998_v42 = vmax.f32 %v982_v56, %v1710_v16  ;;  %v1000_v6 = vmax.f32 %v984_v55, %v1711_v54 }
 0x470   : > { %v1073_v15 = vrot.slane %v1044_v0, 4  ;;  %v1075_v17 = vrot.slane %v1032_v57, 4  ;;  %v1088_v3 = vsel %vm351_vm2, %v1048_v53, %v1087_v41  ;;  %v1086_v59 = vsel %vm351_vm2, %v1085_v2, %v1036_v52 }
 0x471   : > { %v1137_v45 = vrot.slane %v998_v42, 4  ;;  %v1140_v38 = vsel %vm351_vm2, %v998_v42, %v1139_v9  ;;  %v1149_v19 = vrot.slane %v1000_v6, 4  ;;  %v1152_v23 = vsel %vm351_vm2, %v1000_v6, %v1151_v7 }
 0x472   : > { %v1148_v63 = vperm.slane %v1140_v38, %v2006_v26  ;;  %v1160_v18 = vperm.slane %v1152_v23, %v2006_v26  ;;  %v1076_v25 = vsel %vm351_vm2, %v1044_v0, %v1075_v17  ;;  %v1074_v27 = vsel %vm351_vm2, %v1073_v15, %v1032_v57 }
 0x473   : > { %v1138_v4 = vsel %vm351_vm2, %v1137_v45, %v2212_v60  ;;  %v1150_v30 = vsel %vm351_vm2, %v1149_v19, %v2227_v24  ;;  %v1084_v22 = vperm.slane %v1076_v25, %v2014_v49  ;;  %v2342_v31 = vperm.slane %v1074_v27, %v2014_v49 }
 0x474   : > { %v1144_v32 = vperm.slane %v1138_v4, %v2006_v26  ;;  %v1156_v35 = vperm.slane %v1150_v30, %v2006_v26  ;;  %v1197_v34 = vrot.slane %v1160_v18, 4  ;;  %v1199_v29 = vrot.slane %v1148_v63, 4 }
 0x475   : > { %v1104_v39 = vsel %vm351_vm2, %v1084_v22, %v1103_v10  ;;  %v1101_v40 = vrot.slane %v1084_v22, 4  ;;  %v1107_v60 = vrot.slane %v2308_v12, 4  ;;  %v1219_v24 = vrot.slane %v2314_v47, 4 }
 0x476   : > { %v1185_v43 = vrot.slane %v1156_v35, 4  ;;  %v1187_v37 = vrot.slane %v1144_v32, 4  ;;  %v1096_v33 = vperm.slane %v1088_v3, %v2014_v49  ;;  %v1200_v44 = vsel %vm351_vm2, %v1160_v18, %v1199_v29 }
 0x477   : > { %v1100_v26 = vsel %vm351_vm2, %v2342_v31, %v1099_v28  ;;  %v1208_v48 = vperm.slane %v1200_v44, %v2014_v49  ;;  %v1092_v10 = vperm.slane %v1086_v59, %v2014_v49  ;;  %v1198_v50 = vsel %vm351_vm2, %v1197_v34, %v1148_v63 }
 0x478   : > { %v1188_v13 = vsel %vm351_vm2, %v1156_v35, %v1187_v37  ;;  %v1186_v51 = vsel %vm351_vm2, %v1185_v43, %v1144_v32  ;;  %v1109_v52 = vrot.slane %v1096_v33, 4  ;;  %v1204_v53 = vperm.slane %v1198_v50, %v2014_v49 }
 0x479   : > { %v1196_v54 = vperm.slane %v1188_v13, %v2014_v49  ;;  %v1192_v16 = vperm.slane %v1186_v51, %v2014_v49  ;;  %v1221_v55 = vrot.slane %v1208_v48, 4  ;;  %v1105_v56 = vrot.slane %v1092_v10, 4 }
 0x47a   : > { %v1102_v28 = vsel %vm351_vm2, %v1101_v40, %v2278_v62  ;;  %v1110_v58 = vsel %vm351_vm2, %v1109_v52, %v2291_v5  ;;  %v1217_v14 = vrot.slane %v1204_v53, 4  ;;  %v1220_v57 = vsel %vm351_vm2, %v1204_v53, %v1219_v24  ;;  %v1302_v53 = vld [vmem:[%s2448_s3] sm:$0xf] }
 0x47b   : > { %v1216_v0 = vsel %vm351_vm2, %v1196_v54, %v1215_v61  ;;  %v1212_v2 = vsel %vm351_vm2, %v1192_v16, %v1211_v46  ;;  %v1213_v49 = vrot.slane %v1196_v54, 4  ;;  %v1108_v41 = vsel %vm351_vm2, %v1092_v10, %v1107_v60 }
 0x47c   : > { %v1722_v9 = vpack.i.bf16 %v1104_v39, %v1216_v0  ;;  %v1717_v7 = vpack.i.bf16 %v1100_v26, %v1212_v2  ;;  %v1222_v62 = vsel %vm351_vm2, %v1221_v55, %v2295_v21  ;;  %v1106_v42 = vsel %vm351_vm2, %v1105_v56, %v2308_v12 }
 0x47d   : > { %v1214_v6 = vsel %vm351_vm2, %v1213_v49, %v2282_v1  ;;  %v1742_v15 = vpack.i.bf16 %v1110_v58, %v1222_v62  ;;  %v1218_v61 = vsel %vm351_vm2, %v1217_v14, %v2314_v47  ;;  %v1737_v17 = vpack.i.bf16 %v1108_v41, %v1220_v57  ;;  %v1303_v47 = vld [vmem:[%s2449_s4] sm:$0xf] }
 0x47e   : > { %1723 = vrot.lane.b32.xlu1 %v1722_v9, %s1855_s8  ;;  %1718 = vrot.lane.b32.xlu2 %v1717_v7, %s1853_s25  ;;  %v1732_v46 = vpack.i.bf16 %v1102_v28, %v1214_v6  ;;  %v1727_v3 = vpack.i.bf16 %v1106_v42, %v1218_v61  ;;  %v1112_v59 = vsel %vm351_vm2, %v1096_v33, %v1111_v20  ;;  %v1209_v21 = vrot.slane %v1192_v16, 4  ;;  %s1469_s25 = sshll.u32 %s1916_s22, 3  ;;  %s1362_s22 = scalar_lea.sflag [#allocation4], %s1981_s7 }
 0x47f   : > { %v1224_v12 = vsel %vm351_vm2, %v1208_v48, %v1223_v36  ;;  %v1097_v20 = vrot.slane %v2342_v31, 4 }
 0x480   : > { %1733 = vrot.lane.b32.xlu0 %v1732_v46, %s1851_s29  ;;  %v1747_v1 = vpack.i.bf16 %v1112_v59, %v1224_v12  ;;  %v1210_v25 = vsel %vm351_vm2, %v1209_v21, %v2300_v11 }
 0x481   : > { %v1098_v27 = vsel %vm351_vm2, %v1097_v20, %v2287_v8 }
 0x486   : > { %1743 = vrot.lane.b32.xlu1 %v1742_v15, %s1856_s28  ;;  %1728 = vrot.lane.b32.xlu2 %v1727_v3, %s1857_s9  ;;  %s1373_s28 = scalar_lea.hbm %s2450_s5, %s1469_s25  ;;  %s242_s9 = scalar_lea.vmem [#allocation5], %s1455_s11 }
 0x487   : > { %s1375_s10 = sshll.u32 %s242_s9, 4  ;;  %s1377_s12 = sshll.u32 %s1373_s28, 4  ;;  %s1376_s10 = int_to_ptr.vmem [resolvable:$true] %s1375_s10  ;;  %s1378_s12 = int_to_ptr.hbm [resolvable:$true] %s1377_s12 }
 0x488   : > { %1738 = vrot.lane.b32.xlu0 %v1737_v17, %s1852_s23  ;;  %s1796_s14 = sshra.s32 %s1378_s12, 4  ;;  %s1802_s11 = scalar_lea.hbm %s2450_s5, 16  ;;  %s1797_s14 = int_to_ptr.hbm [resolvable:$true] %s1796_s14 }
 0x489   : > { %s1798_s13 = scalar_lea.hbm %s1797_s14, 8  ;;  %p1803_p0 = scmp.lt.s32.totalorder %s1797_s14, %s2450_s5 }
 0x48a   : > { %p1799_p6 = scmp.ne.s32.totalorder %s1797_s14, %s1798_s13  ;;  %p1804_p1 = scmp.lt.s32.totalorder %s1802_s11, %s1798_s13 }
 0x48c   : > { %p1800_p9 = pnand %p1799_p6, %p1945_p11  ;;  %p1805_p3 = por %p1804_p1, %p1803_p0 }
 0x48e   : > { %1748 = vrot.lane.b32.xlu2 %v1747_v1, %s1854_s26  ;;  %p1801_p13 = pneg %p1800_p9 }
 0x490   : > { %1306 = vperm.xlu0 %1531, %v1303_v47   ;;  %p1806_p4 = pnand %p1805_p3, %p1801_p13 }
 0x4d8   : > { %v1719_v5 = vpop.permute.xlu2 %1718 }
 0x4d9   : > { %v1721_v38 = vunpack.i.h.bf16 %v1719_v5  ;;  %v1720_v19 = vunpack.i.l.bf16 %v1719_v5 }
 0x4db   : > { %v1282_v4 = vsel %vm1281_vm9, %v1098_v27, %v1721_v38  ;;  %v1295_v30 = vsel %vm1281_vm9, %v1210_v25, %v1720_v19 }
 0x4e0   : > { %v1729_v36 = vpop.permute.xlu2 %1728 }
 0x4e1   : > { %v1731_v40 = vunpack.i.h.bf16 %v1729_v36  ;;  %v1730_v60 = vunpack.i.l.bf16 %v1729_v36 }
 0x4e8   : > { %v1749_v24 = vpop.permute.xlu2 %1748 }
 0x4e9   : > { %v1751_v48 = vunpack.i.h.bf16 %v1749_v24  ;;  %v1750_v10 = vunpack.i.l.bf16 %v1749_v24 }
 0x4f0   : > { %v1724_v45 = vpop.permute.xlu1 %1723 }
 0x4f1   : > { %v1726_v32 = vunpack.i.h.bf16 %v1724_v45  ;;  %v1725_v35 = vunpack.i.l.bf16 %v1724_v45 }
 0x4f2   : > { %v1734_v23 = vpop.permute.xlu0 %1733 }
 0x4f3   : > { %v1736_v63 = vunpack.i.h.bf16 %v1734_v23  ;;  %v1735_v18 = vunpack.i.l.bf16 %v1734_v23 }
 0x4f5   : > { %v1284_v22 = vsel %vm1283_vm10, %v1282_v4, %v1736_v63  ;;  %v1296_v31 = vsel %vm1283_vm10, %v1295_v30, %v1735_v18 }
 0x4f6   : > { %v1286_v34 = vsel %vm1285_vm11, %v1284_v22, %v1726_v32  ;;  %v1297_v29 = vsel %vm1285_vm11, %v1296_v31, %v1725_v35 }
 0x4f7   : > { %v1288_v44 = vsel %vm1287_vm12, %v1286_v34, %v1731_v40  ;;  %v1298_v26 = vsel %vm1287_vm12, %v1297_v29, %v1730_v60 }
 0x4f8   : > { %v1744_v39 = vpop.permute.xlu1 %1743 }
 0x4f9   : > { %v1746_v8 = vunpack.i.h.bf16 %v1744_v39  ;;  %v1745_v33 = vunpack.i.l.bf16 %v1744_v39 }
 0x4fa   : > { %v1739_v43 = vpop.permute.xlu0 %1738 }
 0x4fb   : > { %v1741_v11 = vunpack.i.h.bf16 %v1739_v43  ;;  %v1740_v37 = vunpack.i.l.bf16 %v1739_v43 }
 0x4fd   : > { %v1290_v50 = vsel %vm1289_vm13, %v1288_v44, %v1741_v11  ;;  %v1299_v13 = vsel %vm1289_vm13, %v1298_v26, %v1740_v37 }
 0x4fe   : > { %v1292_v51 = vsel %vm1291_vm14, %v1290_v50, %v1746_v8  ;;  %v1300_v52 = vsel %vm1291_vm14, %v1299_v13, %v1745_v33 }
 0x4ff   : > { %v1294_v54 = vsel %vm1293_vm15, %v1292_v51, %v1751_v48  ;;  %v1301_v16 = vsel %vm1293_vm15, %v1300_v52, %v1750_v10 }
 0x500   : > { %1328 = vmatpush.msra.mxu2 %v1294_v54  ;;  %1348 = vmatpush.msra.mxu3 %v1301_v16 }
 0x501   : > { %1461 = vmatmul.msk.f32.vlgmr.msra.gmra.mxu2 %vm1309_vm1, %v1302_v53  ;;  %1462 = vmatmul.msk.f32.vlgmr.msra.gmra.mxu3 %vm1309_vm1, %v1302_v53 }
 0x502   : > { %v1307_v55 = vpop.permute.xlu0 %1306 }
 0x584   : > { %v1330_v56 = vpop.f32.mrf.mxu2  ;;  %v1350_v28 = vpop.f32.mrf.mxu3 }
 0x585   : > { %v1331_v58 = vadd.f32 %v1330_v56, %v1307_v55  ;;  %v1351_v14 = vadd.f32 %v1350_v28, %v1307_v55 }
 0x587   : > { %v1354_v57 = vmax.f32 %v1351_v14, 0.0  ;;  %v1353_v0 = vmax.f32 %v1331_v58, 0.0 }
 0x589   : > { %v1357_v2 = vrot.slane %v1354_v57, 4 }
 0x58b   : > { %v1358_v49 = vsel %vm259_vm0, %v1353_v0, %v1357_v2 }
 0x58c   : > { %1360 = vst [vmem:[%s242_s9] sm:$0xff] %v1358_v49 }
 0x58d   : > { %1809 = shalt.err (!%p1806_p4)
}
 0x58e   : > { %1472 = dma.vmem_to_hbm [thread:$0]  (%p1945_p11), %s1376_s10, 128, %s1378_s12, %s1362_s22  }
 0x58f PF: > { %s1389_s7 = sand.u32 1, %s1836_s18   ;;  %p2456_p7 = scmp.ge.s32.totalorder %s1848_s21, 2 }
 0x590   : > { %s1390_s23 = scalar_lea.sflag [#allocation4], %s1389_s7 }
 0x591   : > { %p1479_p5 = pnand %p2456_p7, %p1949_p12 }
 0x593   : > { %p1480_p8 = pneg %p1479_p5 }
 0x595   : > { %1831 = dma.done.wait (%p1480_p8), %s1390_s23, 128  }
 0x596   : > { %1833 = vsyncadd (%p1480_p8), %s1390_s23, 4294967168  ;;  %p18_p10 = scmp.ge.s32.totalorder %s1920_s24, 4   ;;  %s2457_s18 = smov %s1840_s19 }
 0x597   : > { %s2458_s19 = smov %s1844_s20  ;;  %s2459_s20 = smov %s1932_s27 }
 0x598   : > { %s2460_s21 = smov %s1920_s24  ;;  %20 = sbr.rel (!%p18_p10) target bundleno = 5 (0x5), region = 85 }
 0x59d   :  { %1396 = vsyncpa [#allocation3], 1 }
 0x59e   :  { %1398 = vsyncpa [#allocation3 + $0x1], 1 }
 0x59f   :  { %1399 = vsyncpa [#allocation4], 1 }
 0x5a0   :  { %1401 = vsyncpa [#allocation4 + $0x1], 1 }

</bundles_post_ra>
